<compile_context>
chip_gen: v7x
topology: tpu7x:2x2x1
jax: 0.10.0
libtpu: 0.0.40
codegen_flags: <defaults>
</compile_context>

<pallas_src>
import math
from functools import partial

import jax
import jax.numpy as jnp
from jax import lax
from jax.experimental import pallas as pl
from jax.experimental.pallas import tpu as pltpu


_VMEM_LIMIT_BYTES = 48 * 1024 * 1024   # safe on v7x (64 MiB phys) and v5e/v6e (128 MiB phys)
_TARGET_BLOCK_ELEMS = 1 << 20          # ~4 MiB f32 / ~2 MiB bf16 of x per block
_MIN_GRID_STEPS = 4                    # keep v7x's 2 TensorCores busy


# ---------------------------------------------------------------------------
# Kernel 1: conditioning path  --  SiLU -> Linear(E -> 2E), tiled over output
# feature columns.  Emits (1 + scale) and shift directly, in the x dtype.
# ---------------------------------------------------------------------------
def _modulation_kernel(emb_ref, ws_ref, wf_ref, bs_ref, bf_ref,
                       scale1p_ref, shift_ref):
    emb = emb_ref[...].astype(jnp.float32)                  # (B, E)
    silu = emb * (1.0 / (1.0 + jnp.exp(-emb)))               # SiLU in f32 (exp -> EUP)
    silu = silu.astype(ws_ref.dtype)
    ys = jnp.dot(silu, ws_ref[...], preferred_element_type=jnp.float32)   # (B, tn) MXU
    ys = ys + bs_ref[...].astype(jnp.float32) + 1.0           # fold in the "+1"
    yf = jnp.dot(silu, wf_ref[...], preferred_element_type=jnp.float32)
    yf = yf + bf_ref[...].astype(jnp.float32)
    scale1p_ref[...] = ys[:, None, :].astype(scale1p_ref.dtype)
    shift_ref[...] = yf[:, None, :].astype(shift_ref.dtype)


# ---------------------------------------------------------------------------
# Kernel 2: main path  --  LayerNorm(no affine) * scale1p + shift
# Tiled over (batch, seq); feature dim kept whole (reduction axis).
# ---------------------------------------------------------------------------
def _ada_layernorm_kernel(x_ref, scale1p_ref, shift_ref, o_ref, *, eps):
    x = x_ref[...].astype(jnp.float32)                        # (BB, TT, E)
    mean = jnp.mean(x, axis=-1, keepdims=True)
    mean2 = jnp.mean(x * x, axis=-1, keepdims=True)
    inv = lax.rsqrt(mean2 - mean * mean + eps)                # one-pass var, EUP rsqrt
    scale1p = scale1p_ref[...].astype(jnp.float32)             # (BB, 1, E)
    shift = shift_ref[...].astype(jnp.float32)
    o_ref[...] = ((x - mean) * inv * scale1p + shift).astype(o_ref.dtype)


# ---------------------------------------------------------------------------
# Tiling selection
# ---------------------------------------------------------------------------
def _pick_main_blocks(b_dim, t_dim, e_dim):
    """Adaptive (BB, TT) block for the main kernel: ~_TARGET_BLOCK_ELEMS of x per block,
    TT a multiple of 8 (or the full seq), and >= _MIN_GRID_STEPS grid steps when possible."""
    tt = max(8, min(1024, (_TARGET_BLOCK_ELEMS // max(e_dim, 1)) // 8 * 8))
    if t_dim <= tt:
        tt = t_dim                     # full dim: no multiple-of-8 requirement
    bb = 1
    if tt == t_dim:                    # block over batch when the whole seq fits one tile
        bb = max(1, min(b_dim, _TARGET_BLOCK_ELEMS // max(tt * e_dim, 1)))

    def steps(bb_, tt_):
        return pl.cdiv(b_dim, bb_) * pl.cdiv(t_dim, tt_)

    while steps(bb, tt) < _MIN_GRID_STEPS and bb > 1:
        bb = max(1, bb // 2)
    while steps(bb, tt) < _MIN_GRID_STEPS:
        new_tt = max(8, (tt // 2) // 8 * 8)
        if new_tt >= tt:
            break
        tt = new_tt
    return bb, tt


def _pick_cond_tile(e_dim, w_itemsize):
    """Output-column tile for kernel 1: full E when small / not lane-aligned, otherwise a
    multiple of 128 sized so the two double-buffered weight blocks stay within ~16 MiB."""
    if e_dim % 128 != 0 or e_dim <= 512:
        return e_dim
    tn = min(e_dim, 512)
    while tn > 128 and 4 * e_dim * tn * w_itemsize > (16 << 20):
        tn //= 2
    return tn


# ---------------------------------------------------------------------------
# Wrappers
# ---------------------------------------------------------------------------
def _sinusoidal_emb(timestep, n_embd):
    # Constant frequency table + O(B * E/2) sin/cos: stays in the wrapper (too small for a
    # standalone Pallas launch; XLA fuses it).
    half = n_embd // 2
    emb_scale = math.log(10000.0) / (half - 1)
    freq = jnp.exp(jnp.arange(half, dtype=jnp.float32) * -emb_scale)
    arg = timestep.astype(jnp.float32)[:, None] * freq[None, :]
    return jnp.concatenate([jnp.sin(arg), jnp.cos(arg)], axis=-1)   # (B, E)


def _compute_modulation(emb, w_scale_t, w_shift_t, b_scale, b_shift, out_dtype):
    """SiLU + Linear(E -> 2E) in Pallas; returns (1+scale, shift), each (B, 1, E) in out_dtype."""
    b_dim, e_dim = emb.shape
    w_itemsize = jnp.dtype(w_scale_t.dtype).itemsize
    out_itemsize = jnp.dtype(out_dtype).itemsize
    tn = _pick_cond_tile(e_dim, w_itemsize)
    n_steps = pl.cdiv(e_dim, tn)

    cost = pl.CostEstimate(
        flops=2 * b_dim * e_dim * (2 * e_dim) + 10 * n_steps * b_dim * e_dim,
        transcendentals=n_steps * b_dim * e_dim,           # SiLU exp (recomputed per tile)
        bytes_accessed=(n_steps * b_dim * e_dim * 4
                        + 2 * e_dim * e_dim * w_itemsize
                        + 2 * e_dim * 4
                        + 2 * b_dim * e_dim * out_itemsize),
    )
    scale1p, shift = pl.pallas_call(
        _modulation_kernel,
        out_shape=(jax.ShapeDtypeStruct((b_dim, 1, e_dim), out_dtype),
                   jax.ShapeDtypeStruct((b_dim, 1, e_dim), out_dtype)),
        grid=(n_steps,),
        in_specs=[
            pl.BlockSpec((b_dim, e_dim), lambda j: (0, 0)),     # emb (whole, tiny)
            pl.BlockSpec((e_dim, tn), lambda j: (0, j)),        # scale-half weight (E, tn)
            pl.BlockSpec((e_dim, tn), lambda j: (0, j)),        # shift-half weight (E, tn)
            pl.BlockSpec((1, tn), lambda j: (0, j)),            # scale bias
            pl.BlockSpec((1, tn), lambda j: (0, j)),            # shift bias
        ],
        out_specs=(pl.BlockSpec((b_dim, 1, tn), lambda j: (0, 0, j)),
                   pl.BlockSpec((b_dim, 1, tn), lambda j: (0, 0, j))),
        compiler_params=pltpu.CompilerParams(
            dimension_semantics=("parallel",),
            vmem_limit_bytes=_VMEM_LIMIT_BYTES),
        cost_estimate=cost,
    )(emb, w_scale_t, w_shift_t, b_scale, b_shift)
    return scale1p, shift


def ada_layer_norm(x, timestep, params, label_emb=None, eps=1e-5):
    """Forward of AdaLayerNorm.

    x: (B, T, E), timestep: (B,), params: output of prepare_adaln_params,
    label_emb: optional (B, E)."""
    w_scale_t, w_shift_t, b_scale, b_shift = params
    b_dim, t_dim, e_dim = x.shape

    # --- conditioning path ---------------------------------------------------
    emb = _sinusoidal_emb(timestep, e_dim)                        # (B, E)
    if label_emb is not None:
        emb = emb + label_emb.astype(emb.dtype)
    scale1p, shift = _compute_modulation(emb, w_scale_t, w_shift_t,
                                         b_scale, b_shift, x.dtype)   # (B, 1, E) each

    # --- main path: tiled LayerNorm + modulation (no pad / no output slice) ---
    bb, tt = _pick_main_blocks(b_dim, t_dim, e_dim)
    grid = (pl.cdiv(b_dim, bb), pl.cdiv(t_dim, tt))
    itemsize = jnp.dtype(x.dtype).itemsize
    cost = pl.CostEstimate(
        flops=10 * b_dim * t_dim * e_dim,
        transcendentals=b_dim * t_dim,                             # rsqrt per row
        bytes_accessed=2 * b_dim * t_dim * e_dim * itemsize
                       + grid[1] * 2 * b_dim * e_dim * itemsize,
    )
    out = pl.pallas_call(
        partial(_ada_layernorm_kernel, eps=eps),
        out_shape=jax.ShapeDtypeStruct((b_dim, t_dim, e_dim), x.dtype),
        grid=grid,
        in_specs=[
            pl.BlockSpec((bb, tt, e_dim), lambda b, t: (b, t, 0)),
            pl.BlockSpec((bb, 1, e_dim), lambda b, t: (b, 0, 0)),
            pl.BlockSpec((bb, 1, e_dim), lambda b, t: (b, 0, 0)),
        ],
        out_specs=pl.BlockSpec((bb, tt, e_dim), lambda b, t: (b, t, 0)),
        compiler_params=pltpu.CompilerParams(
            dimension_semantics=("parallel", "parallel"),          # megacore / v7x 2-TC sharding
            vmem_limit_bytes=_VMEM_LIMIT_BYTES),
        cost_estimate=cost,
    )(x, scale1p, shift)
    return out


def prepare_adaln_params(weight, bias):
    """One-time layout prep from PyTorch nn.Linear(E, 2E) params (weight (2E,E), bias (2E,)).

    Pre-transposes and pre-splits the weight so the kernel never transposes at runtime and
    both matmul RHS operands are lane-dense (E, E) blocks."""
    two_e, e_dim = weight.shape
    assert two_e == 2 * e_dim
    w_scale_t = jnp.transpose(weight[:e_dim, :])        # (E, E): columns for `scale`
    w_shift_t = jnp.transpose(weight[e_dim:, :])        # (E, E): columns for `shift`
    b_scale = bias[:e_dim].reshape(1, e_dim)
    b_shift = bias[e_dim:].reshape(1, e_dim)
    return w_scale_t, w_shift_t, b_scale, b_shift


def init_adaln_params(key, n_embd, dtype=jnp.float32):
    # PyTorch nn.Linear(n_embd, 2*n_embd) default init: U(-1/sqrt(in), 1/sqrt(in)).
    kw, kb = jax.random.split(key)
    bound = 1.0 / (n_embd ** 0.5)
    weight = jax.random.uniform(kw, (2 * n_embd, n_embd), dtype, minval=-bound, maxval=bound)
    bias = jax.random.uniform(kb, (2 * n_embd,), dtype, minval=-bound, maxval=bound)
    return weight, bias


# ---------------------------------------------------------------------------
# Reference (plain JAX) for correctness check
# ---------------------------------------------------------------------------
def _reference(x, timestep, weight, bias, label_emb=None, eps=1e-5):
    e_dim = x.shape[-1]
    emb = _sinusoidal_emb(timestep, e_dim)
    if label_emb is not None:
        emb = emb + label_emb
    emb = emb * jax.nn.sigmoid(emb)                 # SiLU
    y = (emb @ weight.T + bias)[:, None, :]         # (B, 1, 2E)
    scale, shift = jnp.split(y, 2, axis=2)
    mean = jnp.mean(x, axis=-1, keepdims=True)
    var = jnp.mean((x - mean) ** 2, axis=-1, keepdims=True)
    norm = (x - mean) / jnp.sqrt(var + eps)
    return norm * (1.0 + scale) + shift


if __name__ == "__main__":
    key = jax.random.PRNGKey(0)
    k_x, k_t, k_w, k_l, k_x2 = jax.random.split(key, 5)

    batch, seq, n_embd = 2, 8, 32
    x = jax.random.normal(k_x, (batch, seq, n_embd), dtype=jnp.float32)
    timestep = jax.random.randint(k_t, (batch,), 0, 1000).astype(jnp.float32)
    weight, bias = init_adaln_params(k_w, n_embd)
    params = prepare_adaln_params(weight, bias)      # one-time layout prep (no per-call transpose)
    label_emb = jax.random.normal(k_l, (batch, n_embd), dtype=jnp.float32)

    # forward without label_emb
    y = ada_layer_norm(x, timestep, params)
    jax.block_until_ready(y)
    y_ref = _reference(x, timestep, weight, bias)
    assert y.shape == (batch, seq, n_embd)
    assert jnp.allclose(y, y_ref, atol=1e-4, rtol=1e-4), float(jnp.max(jnp.abs(y - y_ref)))

    # forward with label_emb
    y2 = ada_layer_norm(x, timestep, params, label_emb=label_emb)
    jax.block_until_ready(y2)
    y2_ref = _reference(x, timestep, weight, bias, label_emb=label_emb)
    assert jnp.allclose(y2, y2_ref, atol=1e-4, rtol=1e-4), float(jnp.max(jnp.abs(y2 - y2_ref)))

    # longer, non-tile-multiple seq: exercises adaptive tiling + ragged last seq block
    xr = jax.random.normal(k_x2, (1, 1037, n_embd), dtype=jnp.float32)
    tr = jnp.array([17.0], dtype=jnp.float32)
    yr = ada_layer_norm(xr, tr, params)
    jax.block_until_ready(yr)
    yr_ref = _reference(xr, tr, weight, bias)
    assert yr.shape == xr.shape
    assert jnp.allclose(yr, yr_ref, atol=1e-4, rtol=1e-4), float(jnp.max(jnp.abs(yr - yr_ref)))

    print("KERNEL_OK")
</pallas_src>

<mosaic_0001>
module attributes {stable_mosaic.version = 11 : i64} {
  func.func @_modulation_kernel(%arg0: i32, %arg1: memref<2x32xf32, #tpu.memory_space<vmem>>, %arg2: memref<32x32xf32, #tpu.memory_space<vmem>>, %arg3: memref<32x32xf32, #tpu.memory_space<vmem>>, %arg4: memref<1x32xf32, #tpu.memory_space<vmem>>, %arg5: memref<1x32xf32, #tpu.memory_space<vmem>>, %arg6: memref<2x1x32xf32, #tpu.memory_space<vmem>>, %arg7: memref<2x1x32xf32, #tpu.memory_space<vmem>>) attributes {dimension_semantics = [#tpu.dimension_semantics<parallel>], iteration_bounds = array<i64: 1>, scalar_prefetch = 0 : i64, scratch_operands = 0 : i64, tpu.core_type = #tpu.core_type<tc>, window_params = [{pipeline_mode = #tpu.pipeline_mode<synchronous>, transform_indices = @transform_0, window_bounds = array<i64: 2, 32>}, {transform_indices = @transform_1, window_bounds = array<i64: 32, 32>}, {transform_indices = @transform_2, window_bounds = array<i64: 32, 32>}, {transform_indices = @transform_3, window_bounds = array<i64: 1, 32>}, {transform_indices = @transform_4, window_bounds = array<i64: 1, 32>}, {transform_indices = @transform_5, window_bounds = array<i64: 2, 1, 32>}, {transform_indices = @transform_6, window_bounds = array<i64: 2, 1, 32>}]} {
    %c0 = arith.constant 0 : index
    %c0_0 = arith.constant 0 : index
    %0 = vector.load %arg1[%c0, %c0_0] : memref<2x32xf32, #tpu.memory_space<vmem>>, vector<2x32xf32>
    %cst = arith.constant 0.000000e+00 : f32
    %1 = vector.broadcast %cst : f32 to vector<2x32xf32>
    %2 = arith.subf %1, %0 : vector<2x32xf32>
    %3 = math.exp %2 : vector<2x32xf32>
    %cst_1 = arith.constant 1.000000e+00 : f32
    %4 = vector.broadcast %cst_1 : f32 to vector<2x32xf32>
    %5 = arith.addf %4, %3 : vector<2x32xf32>
    %cst_2 = arith.constant 1.000000e+00 : f32
    %6 = vector.broadcast %cst_2 : f32 to vector<2x32xf32>
    %7 = arith.divf %6, %5 : vector<2x32xf32>
    %8 = arith.mulf %0, %7 : vector<2x32xf32>
    %c0_3 = arith.constant 0 : index
    %c0_4 = arith.constant 0 : index
    %9 = vector.load %arg2[%c0_3, %c0_4] : memref<32x32xf32, #tpu.memory_space<vmem>>, vector<32x32xf32>
    %cst_5 = arith.constant dense<0.000000e+00> : vector<2x32xf32>
    %10 = tpu.matmul %8, %9, %cst_5 {dimension_numbers = #tpu.dot_dimension_numbers<[1], [0], [0], [1], [0, 0, 1, 1], [], []>} : vector<2x32xf32>, vector<32x32xf32>, vector<2x32xf32> -> vector<2x32xf32>
    %c0_6 = arith.constant 0 : index
    %c0_7 = arith.constant 0 : index
    %11 = vector.load %arg4[%c0_6, %c0_7] : memref<1x32xf32, #tpu.memory_space<vmem>>, vector<1x32xf32>
    %12 = vector.broadcast %11 : vector<1x32xf32> to vector<2x32xf32>
    %13 = arith.addf %10, %12 : vector<2x32xf32>
    %cst_8 = arith.constant 1.000000e+00 : f32
    %14 = vector.broadcast %cst_8 : f32 to vector<2x32xf32>
    %15 = arith.addf %13, %14 : vector<2x32xf32>
    %c0_9 = arith.constant 0 : index
    %c0_10 = arith.constant 0 : index
    %16 = vector.load %arg3[%c0_9, %c0_10] : memref<32x32xf32, #tpu.memory_space<vmem>>, vector<32x32xf32>
    %cst_11 = arith.constant dense<0.000000e+00> : vector<2x32xf32>
    %17 = tpu.matmul %8, %16, %cst_11 {dimension_numbers = #tpu.dot_dimension_numbers<[1], [0], [0], [1], [0, 0, 1, 1], [], []>} : vector<2x32xf32>, vector<32x32xf32>, vector<2x32xf32> -> vector<2x32xf32>
    %c0_12 = arith.constant 0 : index
    %c0_13 = arith.constant 0 : index
    %18 = vector.load %arg5[%c0_12, %c0_13] : memref<1x32xf32, #tpu.memory_space<vmem>>, vector<1x32xf32>
    %19 = vector.broadcast %18 : vector<1x32xf32> to vector<2x32xf32>
    %20 = arith.addf %17, %19 : vector<2x32xf32>
    %21 = vector.shape_cast %15 : vector<2x32xf32> to vector<2x1x32xf32>
    %c0_14 = arith.constant 0 : index
    %c0_15 = arith.constant 0 : index
    %c0_16 = arith.constant 0 : index
    %22 = vector.load %arg6[%c0_14, %c0_15, %c0_16] : memref<2x1x32xf32, #tpu.memory_space<vmem>>, vector<2x1x32xf32>
    tpu.vector_store %arg6[%c0_14, %c0_15, %c0_16], %21 {strides = array<i32>} : memref<2x1x32xf32, #tpu.memory_space<vmem>>, vector<2x1x32xf32>,
    %23 = vector.shape_cast %20 : vector<2x32xf32> to vector<2x1x32xf32>
    %c0_17 = arith.constant 0 : index
    %c0_18 = arith.constant 0 : index
    %c0_19 = arith.constant 0 : index
    %24 = vector.load %arg7[%c0_17, %c0_18, %c0_19] : memref<2x1x32xf32, #tpu.memory_space<vmem>>, vector<2x1x32xf32>
    tpu.vector_store %arg7[%c0_17, %c0_18, %c0_19], %23 {strides = array<i32>} : memref<2x1x32xf32, #tpu.memory_space<vmem>>, vector<2x1x32xf32>,
    return
  }
  func.func @transform_0(%arg0: i32) -> (i32, i32) {
    %c0_i32 = arith.constant 0 : i32
    %c0_i32_0 = arith.constant 0 : i32
    %c0_i32_1 = arith.constant 0 : i32
    return %c0_i32, %c0_i32_0 : i32, i32
  }
  func.func @transform_1(%arg0: i32) -> (i32, i32) {
    %c0_i32 = arith.constant 0 : i32
    %c0_i32_0 = arith.constant 0 : i32
    return %c0_i32, %arg0 : i32, i32
  }
  func.func @transform_2(%arg0: i32) -> (i32, i32) {
    %c0_i32 = arith.constant 0 : i32
    %c0_i32_0 = arith.constant 0 : i32
    return %c0_i32, %arg0 : i32, i32
  }
  func.func @transform_3(%arg0: i32) -> (i32, i32) {
    %c0_i32 = arith.constant 0 : i32
    %c0_i32_0 = arith.constant 0 : i32
    return %c0_i32, %arg0 : i32, i32
  }
  func.func @transform_4(%arg0: i32) -> (i32, i32) {
    %c0_i32 = arith.constant 0 : i32
    %c0_i32_0 = arith.constant 0 : i32
    return %c0_i32, %arg0 : i32, i32
  }
  func.func @transform_5(%arg0: i32) -> (i32, i32, i32) {
    %c0_i32 = arith.constant 0 : i32
    %c0_i32_0 = arith.constant 0 : i32
    %c0_i32_1 = arith.constant 0 : i32
    return %c0_i32, %c0_i32_0, %arg0 : i32, i32, i32
  }
  func.func @transform_6(%arg0: i32) -> (i32, i32, i32) {
    %c0_i32 = arith.constant 0 : i32
    %c0_i32_0 = arith.constant 0 : i32
    %c0_i32_1 = arith.constant 0 : i32
    return %c0_i32, %c0_i32_0, %arg0 : i32, i32, i32
  }
}

</mosaic_0001>

<bundles_post_ra>
// kernel: tpu_custom_call.1
= control target key start
LH: loop header
LB: loop body
LE: loop exit
PB: predicated region body
PF: predicated region fallthrough
CT: control target
= control target key end

     0   :  { %12 = vsyncpa [#allocation3], 0  ;;  %s641_s0 = inlined_call_operand.hbm [shape: f32[2,32], index: 0, kind: input, shape index: {}]   ;;  %s642_s1 = inlined_call_operand.hbm [shape: f32[32,32], index: 1, kind: input, shape index: {}]   ;;  %s643_s2 = inlined_call_operand.hbm [shape: f32[32,32], index: 2, kind: input, shape index: {}]   ;;  %s644_s3 = inlined_call_operand.vmem [shape: f32[1,32], index: 3, kind: input, shape index: {}]   ;;  %s645_s4 = inlined_call_operand.vmem [shape: f32[1,32], index: 4, kind: input, shape index: {}]   ;;  %s646_s5 = inlined_call_operand.hbm [shape: f32[2,1,32], index: 5, kind: output, shape index: {0}]   ;;  %s647_s6 = inlined_call_operand.hbm [shape: f32[2,1,32], index: 6, kind: output, shape index: {1}]  }
   0x1   :  { %13 = vsyncpa [#allocation6], 0 }
   0x2   :  { %14 = vsyncpa [#allocation4], 0 }
   0x3   :  { %15 = vsyncpa [#allocation10], 0  ;;  %s510_s21 = smov [#allocation5]   ;;  %s392_s25 = scalar_lea.hbm %s642_s1, 512 }
   0x4   :  { %s31_s22 = sshll.u32 %s510_s21, 4  ;;  %p393_p0 = scmp.ne.s32.totalorder %s642_s1, %s392_s25  ;;  %s32_s22 = int_to_ptr.vmem [resolvable:$true] %s31_s22 }
   0x5   :  { %p396_p1 = scmp.lt.u32.totalorder %s392_s25, %s642_s1 }
   0x7   :  { %p398_p2 = pnand %p396_p1, %p393_p0 }
   0x9   :  { %401 = shalt.err (!%p398_p2)
}
   0xa   :  { %s402_s30 = scalar_lea.vmem %s32_s22, 512  ;;  %p407_p4 = scmp.lt.s32.totalorder %s32_s22, %s32_s22 }
   0xb   :  { %p403_p3 = scmp.ne.s32.totalorder %s32_s22, %s402_s30  ;;  %p408_p5 = scmp.lt.s32.totalorder %s402_s30, %s402_s30 }
   0xd   :  { %p409_p6 = por %p408_p5, %p407_p4 }
   0xf   :  { %p410_p7 = pnand %p409_p6, %p403_p3 }
  0x11   :  { %413 = shalt.err (!%p410_p7)
}
  0x12   :  { %s511_s7 = smov 128   ;;  %s512_s8 = smov 8  }
  0x13   :  { %37 = dma.hbm_to_vmem [thread:$0]  %s642_s1, 512, %s32_s22, [#allocation6], %s511_s7, %s511_s7, %s512_s8  }
  0x14   :  { %s513_s11 = smov [#allocation2]   ;;  %s514_s13 = smov [#allocation7]  }
  0x15   :  { %s22_s12 = sshll.u32 %s513_s11, 4  ;;  %s43_s14 = sshll.u32 %s514_s13, 4  ;;  %s23_s12 = int_to_ptr.vmem [resolvable:$true] %s22_s12  ;;  %s44_s14 = int_to_ptr.vmem [resolvable:$true] %s43_s14 }
  0x16   :  { %s414_s17 = scalar_lea.hbm %s641_s0, 32 }
  0x17   :  { %p415_p8 = scmp.ne.s32.totalorder %s641_s0, %s414_s17  ;;  %p418_p9 = scmp.lt.u32.totalorder %s414_s17, %s641_s0 }
  0x19   :  { %p420_p10 = pnand %p418_p9, %p415_p8 }
  0x1b   :  { %423 = shalt.err (!%p420_p10)
}
  0x1c   :  { %s424_s1 = scalar_lea.vmem %s23_s12, 32  ;;  %p429_p12 = scmp.lt.s32.totalorder %s23_s12, %s23_s12 }
  0x1d   :  { %p425_p11 = scmp.ne.s32.totalorder %s23_s12, %s424_s1  ;;  %p430_p13 = scmp.lt.s32.totalorder %s424_s1, %s424_s1 }
  0x1f   :  { %p431_p0 = por %p430_p13, %p429_p12 }
  0x21   :  { %p432_p1 = pnand %p431_p0, %p425_p11 }
  0x23   :  { %435 = shalt.err (!%p432_p1)
}
  0x24   :  { %25 = dma.hbm_to_vmem [thread:$0]  %s641_s0, 32, %s23_s12, [#allocation3]  }
  0x25   :  { %s436_s26 = scalar_lea.hbm %s643_s2, 512 }
  0x26   :  { %p437_p2 = scmp.ne.s32.totalorder %s643_s2, %s436_s26  ;;  %p440_p3 = scmp.lt.u32.totalorder %s436_s26, %s643_s2 }
  0x28   :  { %p442_p4 = pnand %p440_p3, %p437_p2 }
  0x2a   :  { %445 = shalt.err (!%p442_p4)
}
  0x2b   :  { %s446_s9 = scalar_lea.vmem %s44_s14, 512  ;;  %p451_p6 = scmp.lt.s32.totalorder %s44_s14, %s44_s14 }
  0x2c   :  { %p447_p5 = scmp.ne.s32.totalorder %s44_s14, %s446_s9  ;;  %p452_p7 = scmp.lt.s32.totalorder %s446_s9, %s446_s9 }
  0x2e   :  { %p453_p8 = por %p452_p7, %p451_p6 }
  0x30   :  { %p454_p9 = pnand %p453_p8, %p447_p5 }
  0x32   :  { %457 = shalt.err (!%p454_p9)
}
  0x33   :  { %49 = dma.hbm_to_vmem [thread:$0]  %s643_s2, 512, %s44_s14, [#allocation6], %s511_s7, %s511_s7, %s512_s8  }
  0x34   :  { %502 = dma.done.wait [#allocation3], 32  }
  0x35   :  { %503 = vsyncadd [#allocation3], 4294967264 }
  0x36   :  { %504 = dma.done.wait [#allocation6], 1024  }
  0x37   :  { %505 = vsyncadd [#allocation6], 4294966272  ;;  %v515_v0 = vmov 0.0|0.0   ;;  %vm516_vm0 = vmmov 0   ;;  %v517_v1 = vmov 0.0   ;;  %v71_v2 = vld [vmem:[#allocation5] sm:$0xff]  ;;  %v242_v23 = vlaneseq }
  0x38   :  { %363 = vmatprep.subr.bf16.mxu0 %v515_v0  ;;  %369 = vmatprep.subr.bf16.mxu1 %v515_v0  ;;  %v72_v3 = vld [vmem:[#allocation5 + $0x8] sm:$0xff]  ;;  %v157_v4 = vld [vmem:[#allocation7] sm:$0xff]  ;;  %v73_v7 = vld [vmem:[#allocation5 + $0x10] sm:$0xff]  ;;  %vm82_vm1 = vcmask 261120   ;;  %v518_v21 = vmov 1966171168  }
  0x39   :  { %349 = vmatprep.mubr.msk.f32.mxu0 %vm516_vm0, %v517_v1  ;;  %360 = vmatprep.mubr.msk.f32.mxu1 %vm516_vm0, %v517_v1  ;;  %v364_v5 = vpack.c.bf16 %v72_v3, %v71_v2  ;;  %v158_v6 = vld [vmem:[#allocation7 + $0x8] sm:$0xff]  ;;  %v74_v8 = vld [vmem:[#allocation5 + $0x18] sm:$0xff]  ;;  %v159_v10 = vld [vmem:[#allocation7 + $0x10] sm:$0xff]  ;;  %v240_v22 = vunpack.c.l.s4 %v518_v21  ;;  %v243_v25 = vshrl.u32 %v242_v23, 7  ;;  %vm263_vm2 = vcmask 253952   ;;  %s519_s12 = smov [#allocation9]  }
  0x3a   :  { %v370_v9 = vpack.c.bf16 %v158_v6, %v157_v4  ;;  %v160_v11 = vld [vmem:[#allocation7 + $0x18] sm:$0xff]  ;;  %v367_v13 = vpack.c.bf16 %v74_v8, %v73_v7  ;;  %s310_s13 = sshll.u32 %s519_s12, 4  ;;  %s311_s13 = int_to_ptr.vmem [resolvable:$true] %s310_s13 }
  0x3b   :  { %v63_v12 = vld [vmem:[#allocation2] sm:$0x3]  ;;  %365 = vmatpush3.bf16.msra.mxu0 %v364_v5  ;;  %v373_v15 = vpack.c.bf16 %v160_v11, %v159_v10  ;;  %v241_v24 = vunpack.c.0.s8 %v240_v22  ;;  %p463_p11 = scmp.lt.s32.totalorder %s311_s13, %s311_s13 }
  0x3c   :  { %v64_v14 = vsub.f32 0.0, %v63_v12  ;;  %371 = vmatpush3.bf16.msra.mxu1 %v370_v9  ;;  %366 = vmatprep.subr.bf16.mxu0 %v515_v0  ;;  %v327_v26 = vld [vmem:[%s644_s3] ss:$0 sm:$0xff]  ;;  %s520_s3 = smov [#allocation8]  }
  0x3d   :  { %372 = vmatprep.subr.bf16.mxu1 %v515_v0  ;;  %v329_v27 = vld [vmem:[%s645_s4] ss:$0 sm:$0xff]  ;;  %v244_v28 = vsub.s32 %v241_v24, %v243_v25  ;;  %s298_s14 = sshll.u32 %s520_s3, 4  ;;  %s458_s4 = scalar_lea.vmem %s311_s13, 32  ;;  %s608_s14 = int_to_ptr.vmem [resolvable:$true] %s298_s14 }
  0x3e   :  { %v65_v16 = vmul.f32 1.442695, %v64_v14  ;;  %p459_p10 = scmp.ne.s32.totalorder %s311_s13, %s458_s4  ;;  %p464_p12 = scmp.lt.s32.totalorder %s458_s4, %s458_s4 }
  0x3f   :  { %368 = vmatpush3.bf16.msra.mxu0 %v367_v13 }
  0x40   :  { %388 = vpow2.f32 %v65_v16  ;;  %374 = vmatpush3.bf16.msra.mxu1 %v373_v15  ;;  %p465_p13 = por %p464_p12, %p463_p11 }
  0x42   :  { %p466_p0 = pnand %p465_p13, %p459_p10 }
  0x4a   :  { %v389_v17 = vpop.eup %388 }
  0x4b   :  { %v67_v18 = vadd.f32 1.0, %v389_v17 }
  0x4d   :  { %390 = vrcp.f32 %v67_v18 }
  0x57   :  { %v391_v19 = vpop.eup %390 }
  0x58   :  { %v70_v20 = vmul.f32 %v391_v19, %v63_v12 }
  0x5a   :  { %350 = vmatmul.mubr.msk.f32.vlgmr.msra.gmra.mrb[0].mxu0 %vm82_vm1, %v70_v20  ;;  %361 = vmatmul.mubr.msk.f32.vlgmr.msra.gmra.mrb[0].mxu1 %vm82_vm1, %v70_v20 }
 0x12d   :  { %v152_v29 = vpop.f32.mrb[0].mxu0  ;;  %v234_v30 = vpop.f32.mrb[0].mxu1 }
 0x12e   :  { %v153_v31 = vadd.f32 %v327_v26, %v152_v29  ;;  %v351_v32 = vpop.f32.mrb[1].mxu0  ;;  %v235_v33 = vadd.f32 %v329_v27, %v234_v30  ;;  %v362_v34 = vpop.f32.mrb[1].mxu1 }
 0x130   :  { %v156_v35 = vadd.f32 1.0, %v153_v31  ;;  %v273_v36 = vrot.slane %v235_v33, %v244_v28 }
 0x132   :  { %v245_v37 = vrot.slane %v156_v35, %v244_v28  ;;  %v274_v38 = vcombine.high %v273_v36, %v273_v36  ;;  %v281_v39 = vrot.slane %v273_v36, %v244_v28 }
 0x134   :  { %v246_v40 = vcombine.high %v245_v37, %v245_v37  ;;  %v253_v41 = vrot.slane %v245_v37, %v244_v28  ;;  %v288_v42 = vrot.slane %v274_v38, %v244_v28  ;;  %291 = vst.msk [vmem:[#allocation9] sm:$0x1] %vm263_vm2, %v281_v39 }
 0x136   :  { %v260_v43 = vrot.slane %v246_v40, %v244_v28  ;;  %264 = vst.msk [vmem:[#allocation8] sm:$0x1] %vm263_vm2, %v253_v41  ;;  %292 = vst.msk [vmem:[#allocation9 + $0x1] sm:$0x1] %vm263_vm2, %v288_v42 }
 0x137   :  { %469 = shalt.err (!%p466_p0)
}
 0x138   :  { %s470_s17 = scalar_lea.hbm %s647_s6, 32 }
 0x139   :  { %p471_p1 = scmp.ne.s32.totalorder %s647_s6, %s470_s17  ;;  %p474_p2 = scmp.lt.u32.totalorder %s470_s17, %s647_s6 }
 0x13b   :  { %p476_p3 = pnand %p474_p2, %p471_p1 }
 0x13d   :  { %479 = shalt.err (!%p476_p3)
}
 0x13e   :  { %s521_s1 = smov 16   ;;  %s522_s22 = smov 1   ;;  %265 = vst.msk [vmem:[#allocation8 + $0x1] sm:$0x1] %vm263_vm2, %v260_v43 }
 0x13f   :  { %316 = dma.vmem_to_hbm [thread:$0]  %s311_s13, 32, %s647_s6, [#allocation10], %s521_s1, %s521_s1, %s522_s22  }
 0x140   :  { %s480_s25 = scalar_lea.vmem %s608_s14, 32  ;;  %p485_p5 = scmp.lt.s32.totalorder %s608_s14, %s608_s14 }
 0x141   :  { %p481_p4 = scmp.ne.s32.totalorder %s608_s14, %s480_s25  ;;  %p486_p6 = scmp.lt.s32.totalorder %s480_s25, %s480_s25 }
 0x143   :  { %p487_p7 = por %p486_p6, %p485_p5 }
 0x145   :  { %p488_p8 = pnand %p487_p7, %p481_p4 }
 0x147   :  { %491 = shalt.err (!%p488_p8)
}
 0x148   :  { %s492_s28 = scalar_lea.hbm %s646_s5, 32 }
 0x149   :  { %p493_p9 = scmp.ne.s32.totalorder %s646_s5, %s492_s28  ;;  %p496_p10 = scmp.lt.u32.totalorder %s492_s28, %s646_s5 }
 0x14b   :  { %p498_p11 = pnand %p496_p10, %p493_p9 }
 0x14d   :  { %501 = shalt.err (!%p498_p11)
}
 0x14e   :  { %304 = dma.vmem_to_hbm [thread:$0]  %s608_s14, 32, %s646_s5, [#allocation4], %s521_s1, %s521_s1, %s522_s22  }
 0x14f   :  { %506 = dma.done.wait [#allocation4], 32  }
 0x150   :  { %507 = vsyncadd [#allocation4], 4294967264 }
 0x151   :  { %508 = dma.done.wait [#allocation10], 32  }
 0x152   :  { %509 = vsyncadd [#allocation10], 4294967264 }
 0x153   :  { %323 = vsyncpa [#allocation3], 1 }
 0x154   :  { %324 = vsyncpa [#allocation6], 1 }
 0x155   :  { %325 = vsyncpa [#allocation4], 1 }
 0x156   :  { %326 = vsyncpa [#allocation10], 1 }

</bundles_post_ra>
